<compile_context>
chip_gen: v7x
topology: tpu7x:2x2x1
jax: 0.10.0
libtpu: 0.0.40
codegen_flags: <defaults>
</compile_context>

<pallas_src>
import jax
import jax.numpy as jnp
from jax.experimental import pallas as pl
from jax.experimental.pallas import tpu as pltpu


def encoder_kernel(x_ref, w1_ref, row_ref, wh_ref, eps_ref, out_ref):
    """Single grid point; every operand resident in VMEM.

    x_ref  : (B, D)        bf16  flattened image
    w1_ref : (D, H)        bf16  first Linear weight (bias dropped: cancelled
                                  by training-mode BN)
    row_ref: (1, 2H + 2L)  f32   packed [gamma | beta | head_bias]
    wh_ref : (H, 2L)       bf16  fused [mu | logvar] head weight
    eps_ref: (B, L)        f32   reparameterization noise
    out_ref: (B, OUTW)     f32   lane-dense packed [mu | logvar | z | pad]
    """
    H = w1_ref.shape[1]
    L = eps_ref.shape[1]
    B, OUTW = out_ref.shape

    # static lane slices of the packed row operand
    gamma = row_ref[:, :H]
    beta = row_ref[:, H:2 * H]
    bh = row_ref[:, 2 * H:]

    # ---- hidden layer: Linear (bf16 MXU, f32 acc) -> BN (train) -> ReLU ----
    h = jnp.dot(x_ref[...], w1_ref[...], preferred_element_type=jnp.float32)

    # single-pass batch statistics (one reduce pass instead of two)
    mean = jnp.mean(h, axis=0, keepdims=True)
    msq = jnp.mean(h * h, axis=0, keepdims=True)
    var = msq - mean * mean                              # biased variance, f32
    scale = gamma * jax.lax.rsqrt(var + 1e-5)            # fold gamma
    shift = beta - mean * scale                          # fold mean subtraction
    h = jnp.maximum(h * scale + shift, 0.0)              # BN + ReLU

    # ---- fused heads: one (H, 2L) matmul; result is already [mu | logvar] ----
    heads = jnp.dot(h.astype(jnp.bfloat16), wh_ref[...],
                    preferred_element_type=jnp.float32) + bh
    mu = heads[:, :L]
    lv = heads[:, L:]

    # ---- reparameterization: z = eps * exp(logvar / 2) + mu (f32) ----
    z = eps_ref[...] * jnp.exp(lv * 0.5) + mu

    # lane-dense packed writeback: [mu | lv | z | pad] -> one unmasked store
    pad = OUTW - 3 * L
    if pad > 0:
        out_ref[...] = jnp.concatenate(
            [heads, z, jnp.zeros((B, pad), jnp.float32)], axis=1)
    else:
        out_ref[...] = jnp.concatenate([heads, z], axis=1)


def encoder_forward(img, params, eps):
    """img: (B, C, H, W) float32, eps: (B, L) float32. Returns (z, mu, logvar)."""
    B = img.shape[0]
    x_flat = img.reshape(B, -1)                     # glue: flatten in plain JAX
    D = x_flat.shape[1]
    H = params["w1"].shape[1]
    L = params["wmu"].shape[1]
    OUTW = max(128, ((3 * L + 127) // 128) * 128)   # lane-dense packed width

    # MXU operands in bf16 (halves operand DMA, full-rate MXU on all gens).
    x_bf = x_flat.astype(jnp.bfloat16)
    w1_bf = params["w1"].astype(jnp.bfloat16)
    # Fuse the two heads into one matmul; b1 is intentionally NOT passed
    # (training-mode BN cancels a constant per-feature bias exactly).
    wh_bf = jnp.concatenate([params["wmu"], params["wlv"]],
                            axis=1).astype(jnp.bfloat16)
    bh = jnp.concatenate([params["bmu"], params["blv"]], axis=1)
    # single packed f32 row operand: [gamma | beta | head_bias]
    rowpack = jnp.concatenate([params["gamma"], params["beta"], bh], axis=1)

    vmem = pl.BlockSpec(memory_space=pltpu.VMEM)

    flops = 2 * B * D * H + 2 * B * H * (2 * L)
    bytes_accessed = (x_bf.size * 2 + w1_bf.size * 2 + wh_bf.size * 2
                      + (rowpack.size + eps.size + B * OUTW) * 4)
    cost = pl.CostEstimate(flops=flops,
                           transcendentals=B * L + H,     # exp + rsqrt
                           bytes_accessed=bytes_accessed)

    packed = pl.pallas_call(
        encoder_kernel,
        out_shape=jax.ShapeDtypeStruct((B, OUTW), jnp.float32),
        in_specs=[vmem] * 5,
        out_specs=vmem,
        cost_estimate=cost,
    )(x_bf, w1_bf, rowpack, wh_bf, eps)

    mu = packed[:, :L]
    logvar = packed[:, L:2 * L]
    z = packed[:, 2 * L:3 * L]
    return z, mu, logvar


def init_params(key, img_shape, n_hidden, latent_dim):
    """Deterministic synthetic init (PyTorch-like uniform fan-in scaling)."""
    D = 1
    for s in img_shape:
        D *= s
    ks = jax.random.split(key, 6)

    def lin(kw, kb, fan_in, fan_out):
        bound = 1.0 / jnp.sqrt(fan_in)
        w = jax.random.uniform(kw, (fan_in, fan_out), jnp.float32, -bound, bound)
        b = jax.random.uniform(kb, (1, fan_out), jnp.float32, -bound, bound)
        return w, b

    w1, b1 = lin(ks[0], ks[1], D, n_hidden)
    wmu, bmu = lin(ks[2], ks[3], n_hidden, latent_dim)
    wlv, blv = lin(ks[4], ks[5], n_hidden, latent_dim)
    return {
        # b1 kept for PyTorch parity / reference math, but it is mathematically
        # dead under training-mode BN and is not fed to the kernel.
        "w1": w1, "b1": b1,
        "gamma": jnp.ones((1, n_hidden), jnp.float32),
        "beta": jnp.zeros((1, n_hidden), jnp.float32),
        "wmu": wmu, "bmu": bmu,
        "wlv": wlv, "blv": blv,
    }


if __name__ == "__main__":
    # Small, lane-friendly shapes consistent with the module.
    img_shape = (4, 8, 8)        # (C, H, W) -> D = 256
    batch = 8                    # BatchNorm1d needs batch > 1
    n_hidden = 128               # full 128-lane vregs for BN/ReLU and MXU N-dim
    latent_dim = 32

    key = jax.random.PRNGKey(0)
    k_img, k_par, k_eps = jax.random.split(key, 3)

    img = jax.random.normal(k_img, (batch,) + img_shape, jnp.float32)
    params = init_params(k_par, img_shape, n_hidden, latent_dim)
    eps = jax.random.normal(k_eps, (batch, latent_dim), jnp.float32)

    z, mu, logvar = encoder_forward(img, params, eps)
    jax.block_until_ready((z, mu, logvar))

    # --- reference 1: kernel-equivalent math (bf16 matmuls, no b1, f32 BN) ---
    x_flat = img.reshape(batch, -1)
    h = jnp.dot(x_flat.astype(jnp.bfloat16), params["w1"].astype(jnp.bfloat16),
                preferred_element_type=jnp.float32)
    m = h.mean(0, keepdims=True)
    v = ((h - m) ** 2).mean(0, keepdims=True)
    hn = (h - m) * (params["gamma"] * jax.lax.rsqrt(v + 1e-5)) + params["beta"]
    hn = jnp.maximum(hn, 0.0)
    wh = jnp.concatenate([params["wmu"], params["wlv"]], axis=1).astype(jnp.bfloat16)
    bh = jnp.concatenate([params["bmu"], params["blv"]], axis=1)
    heads = jnp.dot(hn.astype(jnp.bfloat16), wh,
                    preferred_element_type=jnp.float32) + bh
    mu_r = heads[:, :latent_dim]
    lv_r = heads[:, latent_dim:]
    z_r = eps * jnp.exp(lv_r / 2) + mu_r
    assert jnp.allclose(mu, mu_r, atol=1e-3, rtol=1e-3)
    assert jnp.allclose(logvar, lv_r, atol=1e-3, rtol=1e-3)
    assert jnp.allclose(z, z_r, atol=1e-3, rtol=1e-3)

    # --- reference 2: full f32 PyTorch semantics (incl. b1) — bf16 tolerance ---
    hf = x_flat @ params["w1"] + params["b1"]
    mf = hf.mean(0, keepdims=True)
    vf = ((hf - mf) ** 2).mean(0, keepdims=True)
    hf = (hf - mf) / jnp.sqrt(vf + 1e-5) * params["gamma"] + params["beta"]
    hf = jnp.maximum(hf, 0.0)
    mu_f = hf @ params["wmu"] + params["bmu"]
    lv_f = hf @ params["wlv"] + params["blv"]
    z_f = eps * jnp.exp(lv_f / 2) + mu_f
    assert jnp.allclose(mu, mu_f, atol=5e-2, rtol=5e-2)
    assert jnp.allclose(logvar, lv_f, atol=5e-2, rtol=5e-2)
    assert jnp.allclose(z, z_f, atol=5e-2, rtol=5e-2)

    print("KERNEL_OK")
</pallas_src>

<mosaic_0001>
module attributes {stable_mosaic.version = 11 : i64} {
  func.func @encoder_kernel(%arg0: memref<8x256xbf16, #tpu.memory_space<vmem>>, %arg1: memref<256x128xbf16, #tpu.memory_space<vmem>>, %arg2: memref<1x320xf32, #tpu.memory_space<vmem>>, %arg3: memref<128x64xbf16, #tpu.memory_space<vmem>>, %arg4: memref<8x32xf32, #tpu.memory_space<vmem>>, %arg5: memref<8x128xf32, #tpu.memory_space<vmem>>) attributes {dimension_semantics = [], scalar_prefetch = 0 : i64, scratch_operands = 0 : i64, tpu.core_type = #tpu.core_type<tc>} {
    %c0 = arith.constant 0 : index
    %c0_0 = arith.constant 0 : index
    %0 = vector.load %arg2[%c0, %c0_0] : memref<1x320xf32, #tpu.memory_space<vmem>>, vector<1x128xf32>
    %c0_1 = arith.constant 0 : index
    %c128 = arith.constant 128 : index
    %1 = vector.load %arg2[%c0_1, %c128] : memref<1x320xf32, #tpu.memory_space<vmem>>, vector<1x128xf32>
    %c0_2 = arith.constant 0 : index
    %c256 = arith.constant 256 : index
    %2 = vector.load %arg2[%c0_2, %c256] : memref<1x320xf32, #tpu.memory_space<vmem>>, vector<1x64xf32>
    %c0_3 = arith.constant 0 : index
    %c0_4 = arith.constant 0 : index
    %3 = vector.load %arg0[%c0_3, %c0_4] : memref<8x256xbf16, #tpu.memory_space<vmem>>, vector<8x256xbf16>
    %c0_5 = arith.constant 0 : index
    %c0_6 = arith.constant 0 : index
    %4 = vector.load %arg1[%c0_5, %c0_6] : memref<256x128xbf16, #tpu.memory_space<vmem>>, vector<256x128xbf16>
    %cst = arith.constant dense<0.000000e+00> : vector<8x128xf32>
    %5 = tpu.matmul %3, %4, %cst {dimension_numbers = #tpu.dot_dimension_numbers<[1], [0], [0], [1], [0, 0, 1, 1], [], []>} : vector<8x256xbf16>, vector<256x128xbf16>, vector<8x128xf32> -> vector<8x128xf32>
    %cst_7 = arith.constant dense<0.000000e+00> : vector<128xf32>
    %6 = vector.multi_reduction <add>, %5, %cst_7 [0] : vector<8x128xf32> to vector<128xf32>
    %7 = vector.shape_cast %6 : vector<128xf32> to vector<1x128xf32>
    %cst_8 = arith.constant 8.000000e+00 : f32
    %8 = vector.broadcast %cst_8 : f32 to vector<1x128xf32>
    %9 = arith.divf %7, %8 : vector<1x128xf32>
    %10 = arith.mulf %5, %5 : vector<8x128xf32>
    %cst_9 = arith.constant dense<0.000000e+00> : vector<128xf32>
    %11 = vector.multi_reduction <add>, %10, %cst_9 [0] : vector<8x128xf32> to vector<128xf32>
    %12 = vector.shape_cast %11 : vector<128xf32> to vector<1x128xf32>
    %cst_10 = arith.constant 8.000000e+00 : f32
    %13 = vector.broadcast %cst_10 : f32 to vector<1x128xf32>
    %14 = arith.divf %12, %13 : vector<1x128xf32>
    %15 = arith.mulf %9, %9 : vector<1x128xf32>
    %16 = arith.subf %14, %15 : vector<1x128xf32>
    %cst_11 = arith.constant 9.99999974E-6 : f32
    %17 = vector.broadcast %cst_11 : f32 to vector<1x128xf32>
    %18 = arith.addf %16, %17 : vector<1x128xf32>
    %19 = math.rsqrt %18 : vector<1x128xf32>
    %20 = arith.mulf %0, %19 : vector<1x128xf32>
    %21 = arith.mulf %9, %20 : vector<1x128xf32>
    %22 = arith.subf %1, %21 : vector<1x128xf32>
    %23 = vector.broadcast %20 : vector<1x128xf32> to vector<8x128xf32>
    %24 = arith.mulf %5, %23 : vector<8x128xf32>
    %25 = vector.broadcast %22 : vector<1x128xf32> to vector<8x128xf32>
    %26 = arith.addf %24, %25 : vector<8x128xf32>
    %cst_12 = arith.constant 0.000000e+00 : f32
    %27 = vector.broadcast %cst_12 : f32 to vector<8x128xf32>
    %28 = arith.maximumf %26, %27 : vector<8x128xf32>
    %29 = arith.truncf %28 : vector<8x128xf32> to vector<8x128xbf16>
    %c0_13 = arith.constant 0 : index
    %c0_14 = arith.constant 0 : index
    %30 = vector.load %arg3[%c0_13, %c0_14] : memref<128x64xbf16, #tpu.memory_space<vmem>>, vector<128x64xbf16>
    %cst_15 = arith.constant dense<0.000000e+00> : vector<8x64xf32>
    %31 = tpu.matmul %29, %30, %cst_15 {dimension_numbers = #tpu.dot_dimension_numbers<[1], [0], [0], [1], [0, 0, 1, 1], [], []>} : vector<8x128xbf16>, vector<128x64xbf16>, vector<8x64xf32> -> vector<8x64xf32>
    %32 = vector.broadcast %2 : vector<1x64xf32> to vector<8x64xf32>
    %33 = arith.addf %31, %32 : vector<8x64xf32>
    %34 = vector.extract_strided_slice %33 {offsets = [0, 0], sizes = [8, 32], strides = [1, 1]} : vector<8x64xf32> to vector<8x32xf32>
    %35 = vector.extract_strided_slice %33 {offsets = [0, 32], sizes = [8, 32], strides = [1, 1]} : vector<8x64xf32> to vector<8x32xf32>
    %c0_16 = arith.constant 0 : index
    %c0_17 = arith.constant 0 : index
    %36 = vector.load %arg4[%c0_16, %c0_17] : memref<8x32xf32, #tpu.memory_space<vmem>>, vector<8x32xf32>
    %cst_18 = arith.constant 5.000000e-01 : f32
    %37 = vector.broadcast %cst_18 : f32 to vector<8x32xf32>
    %38 = arith.mulf %35, %37 : vector<8x32xf32>
    %39 = math.exp %38 : vector<8x32xf32>
    %40 = arith.mulf %36, %39 : vector<8x32xf32>
    %41 = arith.addf %40, %34 : vector<8x32xf32>
    %cst_19 = arith.constant 0.000000e+00 : f32
    %42 = vector.broadcast %cst_19 : f32 to vector<8x32xf32>
    %43 = tpu.concatenate %33, %41, %42 in 1 : vector<8x64xf32>, vector<8x32xf32>, vector<8x32xf32> -> vector<8x128xf32>
    %c0_20 = arith.constant 0 : index
    %c0_21 = arith.constant 0 : index
    %44 = vector.load %arg5[%c0_20, %c0_21] : memref<8x128xf32, #tpu.memory_space<vmem>>, vector<8x128xf32>
    tpu.vector_store %arg5[%c0_20, %c0_21], %43 {strides = array<i32>} : memref<8x128xf32, #tpu.memory_space<vmem>>, vector<8x128xf32>,
    return
  }
}

</mosaic_0001>

<bundles_post_ra>
// kernel: tpu_custom_call.1
= control target key start
LH: loop header
LB: loop body
LE: loop exit
PB: predicated region body
PF: predicated region fallthrough
CT: control target
= control target key end

     0   :  { %10 = vsyncpa [#allocation3], 0  ;;  %s664_s0 = inlined_call_operand.vmem [shape: bf16[8,256], index: 0, kind: input, shape index: {}]   ;;  %s665_s1 = inlined_call_operand.hbm [shape: bf16[256,128], index: 1, kind: input, shape index: {}]   ;;  %s666_s2 = inlined_call_operand.vmem [shape: f32[1,320], index: 2, kind: input, shape index: {}]   ;;  %s667_s3 = inlined_call_operand.vmem [shape: bf16[128,64], index: 3, kind: input, shape index: {}]   ;;  %s668_s4 = inlined_call_operand.vmem [shape: f32[8,32], index: 4, kind: input, shape index: {}]   ;;  %s669_s5 = inlined_call_operand.hbm [shape: f32[8,128], index: 5, kind: output, shape index: {}]  }
   0x1   :  { %11 = vsyncpa [#allocation4], 0  ;;  %s561_s18 = smov [#allocation2]   ;;  %s513_s22 = scalar_lea.hbm %s665_s1, 2048 }
   0x2   :  { %s19_s19 = sshll.u32 %s561_s18, 4  ;;  %p514_p0 = scmp.ne.s32.totalorder %s665_s1, %s513_s22  ;;  %s20_s19 = int_to_ptr.vmem [resolvable:$true] %s19_s19 }
   0x3   :  { %p517_p1 = scmp.lt.u32.totalorder %s513_s22, %s665_s1 }
   0x5   :  { %p519_p2 = pnand %p517_p1, %p514_p0 }
   0x7   :  { %522 = shalt.err (!%p519_p2)
}
   0x8   :  { %s523_s27 = scalar_lea.vmem %s20_s19, 2048  ;;  %p528_p4 = scmp.lt.s32.totalorder %s20_s19, %s20_s19 }
   0x9   :  { %p524_p3 = scmp.ne.s32.totalorder %s20_s19, %s523_s27  ;;  %p529_p5 = scmp.lt.s32.totalorder %s523_s27, %s523_s27 }
   0xb   :  { %p530_p6 = por %p529_p5, %p528_p4 }
   0xd   :  { %p531_p7 = pnand %p530_p6, %p524_p3 }
   0xf   :  { %534 = shalt.err (!%p531_p7)
}
  0x10   :  { %s562_s28 = smov 64   ;;  %s563_s29 = smov 4  }
  0x11   :  { %25 = dma.hbm_to_vmem [thread:$0]  %s665_s1, 2048, %s20_s19, [#allocation3], %s562_s28, %s562_s28, %s563_s29  }
  0x12   :  { %557 = dma.done.wait [#allocation3], 2048  }
  0x13   :  { %558 = vsyncadd [#allocation3], 4294965248  ;;  %v483_v0 = vld [vmem:[#allocation2 + $0x40] sm:$0xff]   ;;  %v485_v2 = vld [vmem:[#allocation2 + $0x48] sm:$0xff]   ;;  %v564_v20 = vmov 0.0   ;;  %vm565_vm0 = vmmov 0   ;;  %v239_v51 = vlaneseq }
  0x14   :  { %v484_v1 = vld [vmem:[#allocation2] sm:$0xff]   ;;  %425 = vmatprep.subr.bf16.mxu0 %v483_v0  ;;  %v486_v3 = vld [vmem:[#allocation2 + $0x8] sm:$0xff]   ;;  %v487_v4 = vld [vmem:[#allocation2 + $0x50] sm:$0xff]   ;;  %456 = vmatprep.subr.bf16.mxu1 %v564_v20  ;;  %s566_s29 = smov 96   ;;  %vm378_vm1 = vcmask 523264   ;;  %vm380_vm2 = vcmask 785408  }
  0x15   :  { %426 = vmatpush3.bf16.msra.mxu0 %v484_v1  ;;  %v488_v5 = vld [vmem:[#allocation2 + $0x10] sm:$0xff]   ;;  %v489_v6 = vld [vmem:[#allocation2 + $0x58] sm:$0xff]   ;;  %v491_v8 = vld [vmem:[#allocation2 + $0x60] sm:$0xff]   ;;  %472 = vmatprep.mubr.msk.bf16.mxu1 %vm565_vm0, %v564_v20  ;;  %v240_v52 = vshrl.u32 %v239_v51, 7 }
  0x16   :  { %427 = vmatprep.subr.bf16.mxu0 %v485_v2  ;;  %v490_v7 = vld [vmem:[#allocation2 + $0x18] sm:$0xff]   ;;  %v492_v9 = vld [vmem:[#allocation2 + $0x20] sm:$0xff]   ;;  %v493_v10 = vld [vmem:[#allocation2 + $0x68] sm:$0xff]  }
  0x17   :  { %v39_v11 = vld [vmem:[%s664_s0] sm:$0xff]  ;;  %v494_v12 = vld [vmem:[#allocation2 + $0x28] sm:$0xff]   ;;  %v495_v14 = vld [vmem:[#allocation2 + $0x70] sm:$0xff]   ;;  %v241_v54 = vsub.s32 0, %v240_v52 }
  0x18   :  { %v399_v13 = vcombine.high %v39_v11, %v39_v11  ;;  %v496_v15 = vld [vmem:[#allocation2 + $0x30] sm:$0xff]   ;;  %v497_v16 = vld [vmem:[#allocation2 + $0x78] sm:$0xff]   ;;  %v398_v18 = vcombine.low %v39_v11, %v39_v11  ;;  %v501_v19 = vld [vmem:[%s667_s3] sm:$0xff]  }
  0x19   :  { %428 = vmatpush3.bf16.msra.mxu0 %v486_v3  ;;  %v498_v17 = vld [vmem:[#allocation2 + $0x38] sm:$0xff]   ;;  %457 = vmatpush3.bf16.msra.mxu1 %v501_v19  ;;  %v502_v21 = vld [vmem:[%s667_s3 + $0x8] sm:$0xff]   ;;  %v503_v22 = vld [vmem:[%s667_s3 + $0x10] sm:$0xff]  }
  0x1a   :  { %429 = vmatprep.subr.bf16.mxu0 %v487_v4  ;;  %207 = vmatprep.mubr.bf16.mxu0 %v399_v13  ;;  %v504_v23 = vld [vmem:[%s667_s3 + $0x18] sm:$0xff]   ;;  %v505_v24 = vld [vmem:[%s667_s3 + $0x20] sm:$0xff]   ;;  %v506_v25 = vld [vmem:[%s667_s3 + $0x28] sm:$0xff]  }
  0x1b   :  { %458 = vmatprep.subr.bf16.mxu1 %v564_v20  ;;  %v507_v26 = vld [vmem:[%s667_s3 + $0x30] sm:$0xff]   ;;  %v508_v27 = vld [vmem:[%s667_s3 + $0x38] sm:$0xff]   ;;  %v36_v53 = vld [vmem:[%s666_s2] sm:$0x1] }
  0x1c   :  { %v37_v57 = vld [vmem:[%s666_s2 + $0x1] sm:$0x1]  ;;  %v416_v2 = vld [vmem:[%s666_s2 + $0x2] ss:$0 sm:$0xff]  ;;  %s567_s2 = smov [#allocation5]  }
  0x1d   :  { %430 = vmatpush3.bf16.msra.mxu0 %v488_v5  ;;  %459 = vmatpush3.bf16.msra.mxu1 %v502_v21  ;;  %v364_v11 = vld [vmem:[%s668_s4] sm:$0xff]  ;;  %s389_s1 = sshll.u32 %s567_s2, 4  ;;  %s390_s1 = int_to_ptr.vmem [resolvable:$true] %s389_s1 }
  0x1e   :  { %431 = vmatprep.subr.bf16.mxu0 %v489_v6  ;;  %460 = vmatprep.subr.bf16.mxu1 %v564_v20  ;;  %s535_s7 = scalar_lea.vmem %s390_s1, 128  ;;  %p540_p9 = scmp.lt.s32.totalorder %s390_s1, %s390_s1 }
  0x1f   :  { %p536_p8 = scmp.ne.s32.totalorder %s390_s1, %s535_s7  ;;  %p541_p10 = scmp.lt.s32.totalorder %s535_s7, %s535_s7 }
  0x21   :  { %432 = vmatpush3.bf16.msra.mxu0 %v490_v7  ;;  %461 = vmatpush3.bf16.msra.mxu1 %v503_v22  ;;  %p542_p11 = por %p541_p10, %p540_p9 }
  0x22   :  { %433 = vmatprep.subr.bf16.mxu0 %v491_v8  ;;  %462 = vmatprep.subr.bf16.mxu1 %v564_v20 }
  0x23   :  { %p543_p12 = pnand %p542_p11, %p536_p8 }
  0x25   :  { %434 = vmatpush3.bf16.msra.mxu0 %v492_v9  ;;  %463 = vmatpush3.bf16.msra.mxu1 %v504_v23 }
  0x26   :  { %435 = vmatprep.subr.bf16.mxu0 %v493_v10  ;;  %464 = vmatprep.subr.bf16.mxu1 %v564_v20 }
  0x29   :  { %436 = vmatpush3.bf16.msra.mxu0 %v494_v12  ;;  %465 = vmatpush3.bf16.msra.mxu1 %v505_v24 }
  0x2a   :  { %437 = vmatprep.subr.bf16.mxu0 %v495_v14  ;;  %466 = vmatprep.subr.bf16.mxu1 %v564_v20 }
  0x2d   :  { %438 = vmatpush3.bf16.msra.mxu0 %v496_v15  ;;  %467 = vmatpush3.bf16.msra.mxu1 %v506_v25 }
  0x2e   :  { %439 = vmatprep.subr.bf16.mxu0 %v497_v16  ;;  %468 = vmatprep.subr.bf16.mxu1 %v564_v20 }
  0x31   :  { %440 = vmatpush3.bf16.msra.mxu0 %v498_v17  ;;  %469 = vmatpush3.bf16.msra.mxu1 %v507_v26 }
  0x32   :  { %470 = vmatprep.subr.bf16.mxu1 %v564_v20 }
  0x34   :  { %208 = vmatmul.mubr.bf16.vlgmr.msra.gmra.mrb[0].mxu0 %v398_v18 }
  0x35   :  { %471 = vmatpush3.bf16.msra.mxu1 %v508_v27 }
 0x107   :  { %v441_v28 = vpop.f32.mrb[0].mxu0 }
 0x108   :  { %v442_v29 = vpop.f32.mrb[1].mxu0 }
 0x109   :  { %v443_v30 = vadd.f32 %v442_v29, %v441_v28  ;;  %v444_v31 = vpop.f32.mrb[2].mxu0 }
 0x10a   :  { %v445_v32 = vpop.f32.mrb[3].mxu0 }
 0x10b   :  { %v215_v33 = vrot.slane %v443_v30, 4  ;;  %v223_v34 = vmul.f32 %v443_v30, %v443_v30 }
 0x10d   :  { %v216_v35 = vadd.f32 %v443_v30, %v215_v33  ;;  %v224_v36 = vrot.slane %v223_v34, 4 }
 0x10f   :  { %v217_v37 = vrot.slane %v216_v35, 2  ;;  %v225_v38 = vadd.f32 %v224_v36, %v223_v34 }
 0x111   :  { %v218_v39 = vadd.f32 %v217_v37, %v216_v35  ;;  %v226_v40 = vrot.slane %v225_v38, 2 }
 0x113   :  { %v219_v41 = vrot.slane %v218_v39, 1  ;;  %v227_v42 = vadd.f32 %v226_v40, %v225_v38 }
 0x115   :  { %v220_v43 = vadd.f32 %v219_v41, %v218_v39  ;;  %v228_v44 = vrot.slane %v227_v42, 1 }
 0x117   :  { %v229_v45 = vadd.f32 %v228_v44, %v227_v42  ;;  %v222_v46 = vmul.f32 0.125, %v220_v43 }
 0x119   :  { %v230_v47 = vmul.f32 0.125, %v229_v45  ;;  %v231_v48 = vmul.f32 %v222_v46, %v222_v46 }
 0x11b   :  { %v232_v49 = vsub.f32 %v230_v47, %v231_v48 }
 0x11d   :  { %v233_v50 = vadd.f32 1e-05, %v232_v49 }
 0x11f   :  { %509 = vrsqrt.f32 %v233_v50 }
 0x129   :  { %v510_v55 = vpop.eup %509 }
 0x12a   :  { %v235_v56 = vmul.f32 %v510_v55, %v36_v53 }
 0x12c   :  { %v236_v58 = vmul.f32 %v235_v56, %v222_v46  ;;  %v242_v59 = vrot.slane %v235_v56, %v241_v54 }
 0x12e   :  { %v237_v60 = vsub.f32 %v37_v57, %v236_v58  ;;  %v244_v61 = vmul.f32 %v443_v30, %v242_v59 }
 0x130   :  { %v249_v62 = vrot.slane %v237_v60, %v241_v54 }
 0x132   :  { %v251_v63 = vadd.f32 %v249_v62, %v244_v61 }
 0x134   :  { %v252_v0 = vmax.f32 %v251_v63, 0.0 }
 0x136   :  { %v253_v1 = vpack.c.bf16 %v252_v0, %v252_v0 }
 0x138   :  { %473 = vmatmul.mubr.bf16.vlgmr.msra.gmra.mrb[0].mxu1 %v253_v1 }
 0x20b   :  { %v358_v3 = vpop.f32.mrb[0].mxu1 }
 0x20c   :  { %v359_v4 = vadd.f32 %v416_v2, %v358_v3  ;;  %v474_v5 = vpop.f32.mrb[1].mxu1 }
 0x20d   :  { %v361_v6 = vpop.f32.mrb[2].mxu1 }
 0x20e   :  { %v365_v7 = vmul.f32 0.5, %v359_v4  ;;  %v475_v8 = vpop.f32.mrb[3].mxu1 }
 0x210   :  { %v366_v9 = vmul.f32 1.442695, %v365_v7 }
 0x212   :  { %511 = vpow2.f32 %v366_v9 }
 0x21c   :  { %v512_v10 = vpop.eup %511 }
 0x21d   :  { %369 = vrot.lane.b32.xlu0 %v512_v10, %s566_s29 }
 0x28f   :  { %v370_v12 = vpop.permute.xlu0 %369 }
 0x290   :  { %v372_v13 = vmul.f32 %v370_v12, %v364_v11 }
 0x292   :  { %v373_v14 = vadd.f32 %v372_v13, %v359_v4 }
 0x294   :  { %375 = vrot.lane.b32.xlu0 %v373_v14, %s562_s28 }
 0x306   :  { %v376_v15 = vpop.permute.xlu0 %375 }
 0x307   :  { %v379_v16 = vsel %vm378_vm1, %v359_v4, %v376_v15 }
 0x308   :  { %v381_v17 = vsel %vm380_vm2, %v379_v16, 0.0 }
 0x309   :  { %382 = vst [vmem:[#allocation5] sm:$0xff] %v381_v17 }
 0x30a   :  { %546 = shalt.err (!%p543_p12)
}
 0x30b   :  { %s547_s28 = scalar_lea.hbm %s669_s5, 128 }
 0x30c   :  { %p548_p13 = scmp.ne.s32.totalorder %s669_s5, %s547_s28  ;;  %p551_p0 = scmp.lt.u32.totalorder %s547_s28, %s669_s5 }
 0x30e   :  { %p553_p1 = pnand %p551_p0, %p548_p13 }
 0x310   :  { %556 = shalt.err (!%p553_p1)
}
 0x311   :  { %392 = dma.vmem_to_hbm [thread:$0]  %s390_s1, 128, %s669_s5, [#allocation4]  }
 0x312   :  { %559 = dma.done.wait [#allocation4], 128  }
 0x313   :  { %560 = vsyncadd [#allocation4], 4294967168 }
 0x314   :  { %396 = vsyncpa [#allocation3], 1 }
 0x315   :  { %397 = vsyncpa [#allocation4], 1 }

</bundles_post_ra>
